<compile_context>
chip_gen: v6e
topology: v6e:2x2x1
jax: 0.10.0
libtpu: 0.0.40
codegen_flags: <defaults>
</compile_context>

<pallas_src>
import functools

import jax
import jax.numpy as jnp
from jax.experimental import pallas as pl
from jax.experimental.pallas import tpu as pltpu


_MAX_CHANNEL_UNROLL = 64  # per-step static unroll cap (compile time / vregs)


def _vmem_capacity_bytes() -> int:
    """Physical per-TensorCore VMEM; conservative 64 MiB (v7x) fallback."""
    try:
        info = pltpu.get_tpu_info()
        cap = int(getattr(info, "vmem_capacity_bytes", 0) or 0)
        if cap > 0:
            return cap
    except Exception:
        pass
    return 64 << 20


def _pick_bblk(bs: int) -> int:
    """Batch block: full batch unless bs is large, then <=256-row tiles."""
    if bs <= 256:
        return bs
    for d in range(256, 7, -8):          # multiples of 8 -> tile-aligned stores
        if bs % d == 0:
            return d
    return bs                            # full extent is always legal


def _pick_cblk(C: int, F: int, bblk: int, HW: int, budget_bytes: int) -> int:
    """Largest channel block that is lane-dense, tile-aligned and fits VMEM."""

    def fits(cblk: int) -> bool:
        # Double-buffered f32 working set of one grid step:
        #   x (bblk, cblk, HW) + emb (cblk, HW, F) + out (bblk, cblk*F)
        ws = 2 * 4 * (bblk * cblk * HW + cblk * HW * F + bblk * cblk * F)
        return ws <= budget_bytes

    def aligned(cblk: int) -> bool:
        # x block sublane dim tile-aligned; output block lane-dense (unmasked).
        return cblk % 8 == 0 and (cblk * F) % 128 == 0

    # Preferred: the LARGEST aligned divisor of C that fits the budget while
    # leaving >= 2 grid steps on the "parallel" channel axis (v7x megacore).
    for cblk in range(min(C // 2, _MAX_CHANNEL_UNROLL), 0, -1):
        if C % cblk == 0 and aligned(cblk) and fits(cblk):
            return cblk
    # Next: full channel extent in a single step (best for single-TC parts,
    # and the only legal choice when C is too small to align, e.g. C=4).
    if C <= _MAX_CHANNEL_UNROLL and fits(C):
        return C
    # Fallback: largest aligned divisor regardless of budget, else full C.
    for cblk in range(min(C // 2, _MAX_CHANNEL_UNROLL), 0, -1):
        if C % cblk == 0 and aligned(cblk):
            return cblk
    return C


def _spatial_embed_kernel(x_ref, e_ref, o_ref, *, cblk: int, F: int):
    # x_ref: (bblk, cblk, HW)   e_ref: (cblk, HW, F)   o_ref: (bblk, cblk*F)
    #
    # Each channel is an independent (bblk, HW) @ (HW, F) MXU matmul.  The
    # per-channel result is stored straight into its static slice of the
    # lane-dense output tile: no jnp.concatenate, at most one (bblk, F)
    # partial live at a time, per-chunk loads pushed into the loop.
    # (Default jnp.dot precision matched PyTorch within 1e-4 in testing; pass
    # precision=jax.lax.Precision.HIGHEST if bit-closer parity is ever needed.)
    for c in range(cblk):
        f = jnp.dot(x_ref[:, c, :], e_ref[c],
                    preferred_element_type=jnp.float32)
        o_ref[:, c * F:(c + 1) * F] = f.astype(o_ref.dtype)


def learned_spatial_embedding(x, spatial_embedding):
    """x: (bs, C, H, W) f32; spatial_embedding: (C, H, W, F) f32.

    Returns (bs, C * F) f32, matching the PyTorch module's forward.
    """
    bs, C, H, W = x.shape
    Ce, He, We, F = spatial_embedding.shape
    assert (C, H, W) == (Ce, He, We)
    HW = H * W

    # Free, contiguous reshapes only (no transposes -> no extra HBM traffic).
    x_flat = x.reshape(bs, C, HW)                 # (bs, C, H*W)
    emb = spatial_embedding.reshape(C, HW, F)     # (C, H*W, F)

    phys = _vmem_capacity_bytes()
    # Per-step double-buffered working-set budget (~40% of physical, <=48 MiB)
    # and the scoped VMEM limit raised to cover it (~75%, <=96 MiB).
    budget = min(int(phys * 0.4), 48 << 20)
    vmem_limit = min(int(phys * 0.75), 96 << 20)

    bblk = _pick_bblk(bs)
    cblk = _pick_cblk(C, F, bblk, HW, budget)
    nb, nc = bs // bblk, C // cblk

    kernel = functools.partial(_spatial_embed_kernel, cblk=cblk, F=F)

    out = pl.pallas_call(
        kernel,
        out_shape=jax.ShapeDtypeStruct((bs, C * F), jnp.float32),
        grid_spec=pltpu.PrefetchScalarGridSpec(
            num_scalar_prefetch=0,
            grid=(nb, nc),
            in_specs=[
                pl.BlockSpec((bblk, cblk, HW), lambda b, c: (b, c, 0)),
                pl.BlockSpec((cblk, HW, F), lambda b, c: (c, 0, 0)),
            ],
            out_specs=pl.BlockSpec((bblk, cblk * F), lambda b, c: (b, c)),
        ),
        compiler_params=pltpu.CompilerParams(
            # Both axes are fully independent -> shard across TCs on v7x;
            # measured no-op on single-TC v5e/v6e.
            dimension_semantics=("parallel", "parallel"),
            vmem_limit_bytes=vmem_limit,
        ),
    )(x_flat, emb)

    return out


if __name__ == "__main__":
    # Small shapes consistent with the module (num_features default 8).
    bs, C, H, W, F = 2, 4, 16, 16, 8

    key = jax.random.PRNGKey(0)
    kx, ke = jax.random.split(key)
    x = jax.random.normal(kx, (bs, C, H, W), dtype=jnp.float32)
    # Deterministic init of the learned parameter (torch.randn equivalent).
    spatial_embedding = jax.random.normal(ke, (C, H, W, F), dtype=jnp.float32)

    out = jax.block_until_ready(learned_spatial_embedding(x, spatial_embedding))

    # Pure-JAX reference for sanity.
    ref = jnp.einsum("bchw,chwf->bcf", x, spatial_embedding).reshape(bs, C * F)
    assert out.shape == (bs, C * F)
    assert jnp.allclose(out, ref, atol=1e-4, rtol=1e-4)

    print("KERNEL_OK")
</pallas_src>

<mosaic_0001>
module attributes {stable_mosaic.version = 11 : i64} {
  func.func @_spatial_embed_kernel(%arg0: i32, %arg1: i32, %arg2: memref<2x4x256xf32, #tpu.memory_space<vmem>>, %arg3: memref<4x256x8xf32, #tpu.memory_space<vmem>>, %arg4: memref<2x32xf32, #tpu.memory_space<vmem>>) attributes {dimension_semantics = [#tpu.dimension_semantics<parallel>, #tpu.dimension_semantics<parallel>], iteration_bounds = array<i64: 1, 1>, scalar_prefetch = 0 : i64, scratch_operands = 0 : i64, tpu.core_type = #tpu.core_type<tc>, window_params = [{transform_indices = @transform_0, window_bounds = array<i64: 2, 4, 256>}, {transform_indices = @transform_1, window_bounds = array<i64: 4, 256, 8>}, {transform_indices = @transform_2, window_bounds = array<i64: 2, 32>}]} {
    %c0 = arith.constant 0 : index
    %c0_0 = arith.constant 0 : index
    %c0_1 = arith.constant 0 : index
    %0 = vector.load %arg2[%c0, %c0_0, %c0_1] : memref<2x4x256xf32, #tpu.memory_space<vmem>>, vector<2x1x256xf32>
    %1 = vector.shape_cast %0 : vector<2x1x256xf32> to vector<2x256xf32>
    %c0_2 = arith.constant 0 : index
    %c0_3 = arith.constant 0 : index
    %c0_4 = arith.constant 0 : index
    %2 = vector.load %arg3[%c0_2, %c0_3, %c0_4] : memref<4x256x8xf32, #tpu.memory_space<vmem>>, vector<1x256x8xf32>
    %3 = vector.shape_cast %2 : vector<1x256x8xf32> to vector<256x8xf32>
    %cst = arith.constant dense<0.000000e+00> : vector<2x8xf32>
    %4 = tpu.matmul %1, %3, %cst {dimension_numbers = #tpu.dot_dimension_numbers<[1], [0], [0], [1], [0, 0, 1, 1], [], []>} : vector<2x256xf32>, vector<256x8xf32>, vector<2x8xf32> -> vector<2x8xf32>
    %c0_5 = arith.constant 0 : index
    %c0_6 = arith.constant 0 : index
    %5 = vector.load %arg4[%c0_5, %c0_6] : memref<2x32xf32, #tpu.memory_space<vmem>>, vector<2x8xf32>
    tpu.vector_store %arg4[%c0_5, %c0_6], %4 {strides = array<i32>} : memref<2x32xf32, #tpu.memory_space<vmem>>, vector<2x8xf32>,
    %c0_7 = arith.constant 0 : index
    %c1 = arith.constant 1 : index
    %c0_8 = arith.constant 0 : index
    %6 = vector.load %arg2[%c0_7, %c1, %c0_8] : memref<2x4x256xf32, #tpu.memory_space<vmem>>, vector<2x1x256xf32>
    %7 = vector.shape_cast %6 : vector<2x1x256xf32> to vector<2x256xf32>
    %c1_9 = arith.constant 1 : index
    %c0_10 = arith.constant 0 : index
    %c0_11 = arith.constant 0 : index
    %8 = vector.load %arg3[%c1_9, %c0_10, %c0_11] : memref<4x256x8xf32, #tpu.memory_space<vmem>>, vector<1x256x8xf32>
    %9 = vector.shape_cast %8 : vector<1x256x8xf32> to vector<256x8xf32>
    %cst_12 = arith.constant dense<0.000000e+00> : vector<2x8xf32>
    %10 = tpu.matmul %7, %9, %cst_12 {dimension_numbers = #tpu.dot_dimension_numbers<[1], [0], [0], [1], [0, 0, 1, 1], [], []>} : vector<2x256xf32>, vector<256x8xf32>, vector<2x8xf32> -> vector<2x8xf32>
    %c0_13 = arith.constant 0 : index
    %c8 = arith.constant 8 : index
    %11 = vector.load %arg4[%c0_13, %c8] : memref<2x32xf32, #tpu.memory_space<vmem>>, vector<2x8xf32>
    tpu.vector_store %arg4[%c0_13, %c8], %10 {strides = array<i32>} : memref<2x32xf32, #tpu.memory_space<vmem>>, vector<2x8xf32>,
    %c0_14 = arith.constant 0 : index
    %c2 = arith.constant 2 : index
    %c0_15 = arith.constant 0 : index
    %12 = vector.load %arg2[%c0_14, %c2, %c0_15] : memref<2x4x256xf32, #tpu.memory_space<vmem>>, vector<2x1x256xf32>
    %13 = vector.shape_cast %12 : vector<2x1x256xf32> to vector<2x256xf32>
    %c2_16 = arith.constant 2 : index
    %c0_17 = arith.constant 0 : index
    %c0_18 = arith.constant 0 : index
    %14 = vector.load %arg3[%c2_16, %c0_17, %c0_18] : memref<4x256x8xf32, #tpu.memory_space<vmem>>, vector<1x256x8xf32>
    %15 = vector.shape_cast %14 : vector<1x256x8xf32> to vector<256x8xf32>
    %cst_19 = arith.constant dense<0.000000e+00> : vector<2x8xf32>
    %16 = tpu.matmul %13, %15, %cst_19 {dimension_numbers = #tpu.dot_dimension_numbers<[1], [0], [0], [1], [0, 0, 1, 1], [], []>} : vector<2x256xf32>, vector<256x8xf32>, vector<2x8xf32> -> vector<2x8xf32>
    %c0_20 = arith.constant 0 : index
    %c16 = arith.constant 16 : index
    %17 = vector.load %arg4[%c0_20, %c16] : memref<2x32xf32, #tpu.memory_space<vmem>>, vector<2x8xf32>
    tpu.vector_store %arg4[%c0_20, %c16], %16 {strides = array<i32>} : memref<2x32xf32, #tpu.memory_space<vmem>>, vector<2x8xf32>,
    %c0_21 = arith.constant 0 : index
    %c3 = arith.constant 3 : index
    %c0_22 = arith.constant 0 : index
    %18 = vector.load %arg2[%c0_21, %c3, %c0_22] : memref<2x4x256xf32, #tpu.memory_space<vmem>>, vector<2x1x256xf32>
    %19 = vector.shape_cast %18 : vector<2x1x256xf32> to vector<2x256xf32>
    %c3_23 = arith.constant 3 : index
    %c0_24 = arith.constant 0 : index
    %c0_25 = arith.constant 0 : index
    %20 = vector.load %arg3[%c3_23, %c0_24, %c0_25] : memref<4x256x8xf32, #tpu.memory_space<vmem>>, vector<1x256x8xf32>
    %21 = vector.shape_cast %20 : vector<1x256x8xf32> to vector<256x8xf32>
    %cst_26 = arith.constant dense<0.000000e+00> : vector<2x8xf32>
    %22 = tpu.matmul %19, %21, %cst_26 {dimension_numbers = #tpu.dot_dimension_numbers<[1], [0], [0], [1], [0, 0, 1, 1], [], []>} : vector<2x256xf32>, vector<256x8xf32>, vector<2x8xf32> -> vector<2x8xf32>
    %c0_27 = arith.constant 0 : index
    %c24 = arith.constant 24 : index
    %23 = vector.load %arg4[%c0_27, %c24] : memref<2x32xf32, #tpu.memory_space<vmem>>, vector<2x8xf32>
    tpu.vector_store %arg4[%c0_27, %c24], %22 {strides = array<i32>} : memref<2x32xf32, #tpu.memory_space<vmem>>, vector<2x8xf32>,
    return
  }
  func.func @transform_0(%arg0: i32, %arg1: i32) -> (i32, i32, i32) {
    %c0_i32 = arith.constant 0 : i32
    %c0_i32_0 = arith.constant 0 : i32
    return %arg0, %arg1, %c0_i32 : i32, i32, i32
  }
  func.func @transform_1(%arg0: i32, %arg1: i32) -> (i32, i32, i32) {
    %c0_i32 = arith.constant 0 : i32
    %c0_i32_0 = arith.constant 0 : i32
    %c0_i32_1 = arith.constant 0 : i32
    return %arg1, %c0_i32, %c0_i32_0 : i32, i32, i32
  }
  func.func @transform_2(%arg0: i32, %arg1: i32) -> (i32, i32) {
    %c0_i32 = arith.constant 0 : i32
    return %arg0, %arg1 : i32, i32
  }
}

</mosaic_0001>

<bundles_post_ra>
// kernel: tpu_custom_call.1
= control target key start
LH: loop header
LB: loop body
LE: loop exit
PB: predicated region body
PF: predicated region fallthrough
CT: control target
= control target key end

     0   :  { %v850_v30 = vmov 1966171168   ;;  %v53_v32 = vlaneseq  ;;  %s1295_s0 = inlined_call_operand.vmem [shape: f32[2,4,256], index: 0, kind: input, shape index: {}]   ;;  %s1296_s1 = inlined_call_operand.vmem [shape: f32[4,256,8], index: 1, kind: input, shape index: {}]   ;;  %s1297_s2 = inlined_call_operand.hbm [shape: f32[2,32], index: 2, kind: output, shape index: {}]  }
   0x1   :  { %v46_v0 = vld [vmem:[%s1296_s1 + $0xf8] sm:$0xff]  ;;  %v45_v4 = vld [vmem:[%s1296_s1 + $0xf0] sm:$0xff]  ;;  %v44_v8 = vld [vmem:[%s1296_s1 + $0xe8] sm:$0xff]  ;;  %v51_v31 = vunpack.c.l.s4 %v850_v30 }
   0x2   :  { %v614_v1 = vld [vmem:[%s1296_s1 + $0x1f8] sm:$0xff]  ;;  %683 = vmatprep.subr.mxu0 %v46_v0  ;;  %v613_v5 = vld [vmem:[%s1296_s1 + $0x1f0] sm:$0xff]  ;;  %v612_v9 = vld [vmem:[%s1296_s1 + $0x1e8] sm:$0xff]  ;;  %v54_v42 = vshrl.u32 %v53_v32, 7 }
   0x3   :  { %v30_v2 = vld [vmem:[%s1296_s1 + $0x78] sm:$0xff]  ;;  %718 = vmatprep.subr.mxu1 %v614_v1  ;;  %v29_v6 = vld [vmem:[%s1296_s1 + $0x70] sm:$0xff]  ;;  %v28_v10 = vld [vmem:[%s1296_s1 + $0x68] sm:$0xff]  ;;  %v52_v41 = vunpack.c.0.s8 %v51_v31 }
   0x4   :  { %v598_v3 = vld [vmem:[%s1296_s1 + $0x178] sm:$0xff]  ;;  %684 = vmatpush3.msra.mxu0 %v30_v2  ;;  %v597_v7 = vld [vmem:[%s1296_s1 + $0x170] sm:$0xff]  ;;  %v596_v11 = vld [vmem:[%s1296_s1 + $0x168] sm:$0xff] }
   0x5   :  { %719 = vmatpush3.msra.mxu1 %v598_v3  ;;  %685 = vmatprep.subr.mxu0 %v45_v4  ;;  %v43_v12 = vld [vmem:[%s1296_s1 + $0xe0] sm:$0xff]  ;;  %v42_v16 = vld [vmem:[%s1296_s1 + $0xd8] sm:$0xff]  ;;  %v41_v20 = vld [vmem:[%s1296_s1 + $0xd0] sm:$0xff]  ;;  %v1014_v53 = vsub.s32 %v52_v41, %v54_v42 }
   0x6   :  { %720 = vmatprep.subr.mxu1 %v613_v5  ;;  %686 = vmatpush3.msra.mxu0 %v29_v6  ;;  %v611_v13 = vld [vmem:[%s1296_s1 + $0x1e0] sm:$0xff]  ;;  %v610_v17 = vld [vmem:[%s1296_s1 + $0x1d8] sm:$0xff]  ;;  %v609_v21 = vld [vmem:[%s1296_s1 + $0x1d0] sm:$0xff] }
   0x7   :  { %721 = vmatpush3.msra.mxu1 %v597_v7  ;;  %687 = vmatprep.subr.mxu0 %v44_v8  ;;  %v27_v14 = vld [vmem:[%s1296_s1 + $0x60] sm:$0xff]  ;;  %v26_v18 = vld [vmem:[%s1296_s1 + $0x58] sm:$0xff]  ;;  %v25_v22 = vld [vmem:[%s1296_s1 + $0x50] sm:$0xff] }
   0x8   :  { %722 = vmatprep.subr.mxu1 %v612_v9  ;;  %v595_v15 = vld [vmem:[%s1296_s1 + $0x160] sm:$0xff]  ;;  %688 = vmatpush3.msra.mxu0 %v28_v10  ;;  %v594_v19 = vld [vmem:[%s1296_s1 + $0x158] sm:$0xff]  ;;  %v593_v23 = vld [vmem:[%s1296_s1 + $0x150] sm:$0xff] }
   0x9   :  { %723 = vmatpush3.msra.mxu1 %v596_v11  ;;  %689 = vmatprep.subr.mxu0 %v43_v12  ;;  %v40_v24 = vld [vmem:[%s1296_s1 + $0xc8] sm:$0xff]  ;;  %v39_v28 = vld [vmem:[%s1296_s1 + $0xc0] sm:$0xff]  ;;  %v38_v35 = vld [vmem:[%s1296_s1 + $0xb8] sm:$0xff] }
   0xa   :  { %724 = vmatprep.subr.mxu1 %v611_v13  ;;  %690 = vmatpush3.msra.mxu0 %v27_v14  ;;  %v608_v25 = vld [vmem:[%s1296_s1 + $0x1c8] sm:$0xff]  ;;  %v607_v29 = vld [vmem:[%s1296_s1 + $0x1c0] sm:$0xff]  ;;  %v606_v36 = vld [vmem:[%s1296_s1 + $0x1b8] sm:$0xff] }
   0xb   :  { %725 = vmatpush3.msra.mxu1 %v595_v15  ;;  %691 = vmatprep.subr.mxu0 %v42_v16  ;;  %v24_v26 = vld [vmem:[%s1296_s1 + $0x48] sm:$0xff]  ;;  %v23_v33 = vld [vmem:[%s1296_s1 + $0x40] sm:$0xff]  ;;  %v22_v37 = vld [vmem:[%s1296_s1 + $0x38] sm:$0xff] }
   0xc   :  { %726 = vmatprep.subr.mxu1 %v610_v17  ;;  %692 = vmatpush3.msra.mxu0 %v26_v18  ;;  %v592_v27 = vld [vmem:[%s1296_s1 + $0x148] sm:$0xff]  ;;  %v591_v34 = vld [vmem:[%s1296_s1 + $0x140] sm:$0xff]  ;;  %v590_v38 = vld [vmem:[%s1296_s1 + $0x138] sm:$0xff] }
   0xd   :  { %727 = vmatpush3.msra.mxu1 %v594_v19  ;;  %693 = vmatprep.subr.mxu0 %v41_v20  ;;  %v37_v39 = vld [vmem:[%s1296_s1 + $0xb0] sm:$0xff]  ;;  %v36_v45 = vld [vmem:[%s1296_s1 + $0xa8] sm:$0xff]  ;;  %v35_v49 = vld [vmem:[%s1296_s1 + $0xa0] sm:$0xff] }
   0xe   :  { %728 = vmatprep.subr.mxu1 %v609_v21  ;;  %694 = vmatpush3.msra.mxu0 %v25_v22  ;;  %v605_v40 = vld [vmem:[%s1296_s1 + $0x1b0] sm:$0xff]  ;;  %v604_v46 = vld [vmem:[%s1296_s1 + $0x1a8] sm:$0xff]  ;;  %v603_v50 = vld [vmem:[%s1296_s1 + $0x1a0] sm:$0xff] }
   0xf   :  { %729 = vmatpush3.msra.mxu1 %v593_v23  ;;  %695 = vmatprep.subr.mxu0 %v40_v24  ;;  %v21_v43 = vld [vmem:[%s1296_s1 + $0x30] sm:$0xff]  ;;  %v20_v47 = vld [vmem:[%s1296_s1 + $0x28] sm:$0xff]  ;;  %v19_v51 = vld [vmem:[%s1296_s1 + $0x20] sm:$0xff] }
  0x10   :  { %730 = vmatprep.subr.mxu1 %v608_v25  ;;  %696 = vmatpush3.msra.mxu0 %v24_v26  ;;  %v589_v44 = vld [vmem:[%s1296_s1 + $0x130] sm:$0xff]  ;;  %v588_v48 = vld [vmem:[%s1296_s1 + $0x128] sm:$0xff]  ;;  %v587_v52 = vld [vmem:[%s1296_s1 + $0x120] sm:$0xff] }
  0x11   :  { %731 = vmatpush3.msra.mxu1 %v592_v27  ;;  %697 = vmatprep.subr.mxu0 %v39_v28  ;;  %v12_v54 = vld [vmem:[%s1295_s0] ss:$4 sm:$0x3]  ;;  %v580_v55 = vld [vmem:[%s1295_s0 + $0x8] ss:$4 sm:$0x3] }
  0x12   :  { %732 = vmatprep.subr.mxu1 %v607_v29  ;;  %698 = vmatpush3.msra.mxu0 %v23_v33  ;;  %v34_v56 = vld [vmem:[%s1296_s1 + $0x98] sm:$0xff]  ;;  %v49_v58 = vcombine.low %v12_v54, %v580_v55  ;;  %v581_v59 = vld [vmem:[%s1295_s0 + $0x1] ss:$4 sm:$0x3]  ;;  %v33_v63 = vld [vmem:[%s1296_s1 + $0x90] sm:$0xff] }
  0x13   :  { %733 = vmatpush3.msra.mxu1 %v591_v34  ;;  %699 = vmatprep.subr.mxu0 %v38_v35  ;;  %v602_v57 = vld [vmem:[%s1296_s1 + $0x198] sm:$0xff]  ;;  %v582_v62 = vld [vmem:[%s1295_s0 + $0x9] ss:$4 sm:$0x3]  ;;  %v601_v0 = vld [vmem:[%s1296_s1 + $0x190] sm:$0xff] }
  0x14   :  { %734 = vmatprep.subr.mxu1 %v606_v36  ;;  %700 = vmatpush3.msra.mxu0 %v22_v37  ;;  %v18_v60 = vld [vmem:[%s1296_s1 + $0x18] sm:$0xff]  ;;  %v56_v1 = vrot.slane %v49_v58, %v1014_v53  ;;  %v185_v2 = vcombine.low %v581_v59, %v582_v62  ;;  %v17_v3 = vld [vmem:[%s1296_s1 + $0x10] sm:$0xff]  ;;  %v32_v5 = vld [vmem:[%s1296_s1 + $0x88] sm:$0xff] }
  0x15   :  { %735 = vmatpush3.msra.mxu1 %v590_v38  ;;  %701 = vmatprep.subr.mxu0 %v37_v39  ;;  %v586_v61 = vld [vmem:[%s1296_s1 + $0x118] sm:$0xff]  ;;  %v585_v4 = vld [vmem:[%s1296_s1 + $0x110] sm:$0xff]  ;;  %v600_v6 = vld [vmem:[%s1296_s1 + $0x188] sm:$0xff] }
  0x16   :  { %736 = vmatprep.subr.mxu1 %v605_v40  ;;  %702 = vmatpush3.msra.mxu0 %v21_v43  ;;  %v57_v7 = vcombine.high %v56_v1, %v56_v1  ;;  %v192_v8 = vrot.slane %v185_v2, %v1014_v53  ;;  %v16_v9 = vld [vmem:[%s1296_s1 + $0x8] sm:$0xff]  ;;  %v31_v11 = vld [vmem:[%s1296_s1 + $0x80] sm:$0xff]  ;;  %v64_v18 = vrot.slane %v56_v1, %v1014_v53  ;;  %v648_v20 = vld [vmem:[%s1296_s1 + $0x2f8] sm:$0xff] }
  0x17   :  { %737 = vmatpush3.msra.mxu1 %v589_v44  ;;  %703 = vmatprep.subr.mxu0 %v36_v45  ;;  %v584_v10 = vld [vmem:[%s1296_s1 + $0x108] sm:$0xff]  ;;  %v599_v12 = vld [vmem:[%s1296_s1 + $0x180] sm:$0xff]  ;;  %v682_v21 = vld [vmem:[%s1296_s1 + $0x3f8] sm:$0xff] }
  0x18   :  { %738 = vmatprep.subr.mxu1 %v604_v46  ;;  %704 = vmatpush3.msra.mxu0 %v20_v47  ;;  %v71_v13 = vrot.slane %v57_v7, %v1014_v53  ;;  %v193_v14 = vcombine.high %v192_v8, %v192_v8  ;;  %v15_v15 = vld [vmem:[%s1296_s1] sm:$0xff]  ;;  %v200_v19 = vrot.slane %v192_v8, %v1014_v53  ;;  %v632_v22 = vld [vmem:[%s1296_s1 + $0x278] sm:$0xff]  ;;  %v647_v24 = vld [vmem:[%s1296_s1 + $0x2f0] sm:$0xff] }
  0x19   :  { %739 = vmatpush3.msra.mxu1 %v588_v48  ;;  %705 = vmatprep.subr.mxu0 %v35_v49  ;;  %v583_v16 = vld [vmem:[%s1296_s1 + $0x100] sm:$0xff]  ;;  %v666_v23 = vld [vmem:[%s1296_s1 + $0x378] sm:$0xff]  ;;  %v681_v25 = vld [vmem:[%s1296_s1 + $0x3f0] sm:$0xff] }
  0x1a   :  { %740 = vmatprep.subr.mxu1 %v603_v50  ;;  %706 = vmatpush3.msra.mxu0 %v19_v51  ;;  %v207_v17 = vrot.slane %v193_v14, %v1014_v53  ;;  %v631_v26 = vld [vmem:[%s1296_s1 + $0x270] sm:$0xff]  ;;  %v646_v28 = vld [vmem:[%s1296_s1 + $0x2e8] sm:$0xff]  ;;  %v645_v32 = vld [vmem:[%s1296_s1 + $0x2e0] sm:$0xff] }
  0x1b   :  { %741 = vmatpush3.msra.mxu1 %v587_v52  ;;  %707 = vmatprep.subr.mxu0 %v34_v56  ;;  %v665_v27 = vld [vmem:[%s1296_s1 + $0x370] sm:$0xff]  ;;  %v680_v29 = vld [vmem:[%s1296_s1 + $0x3e8] sm:$0xff]  ;;  %v679_v33 = vld [vmem:[%s1296_s1 + $0x3e0] sm:$0xff] }
  0x1c   :  { %742 = vmatprep.subr.mxu1 %v602_v57  ;;  %708 = vmatpush3.msra.mxu0 %v18_v60  ;;  %v630_v30 = vld [vmem:[%s1296_s1 + $0x268] sm:$0xff]  ;;  %v629_v34 = vld [vmem:[%s1296_s1 + $0x260] sm:$0xff]  ;;  %v644_v36 = vld [vmem:[%s1296_s1 + $0x2d8] sm:$0xff] }
  0x1d   :  { %743 = vmatpush3.msra.mxu1 %v586_v61  ;;  %709 = vmatprep.subr.mxu0 %v33_v63  ;;  %v664_v31 = vld [vmem:[%s1296_s1 + $0x368] sm:$0xff]  ;;  %v663_v35 = vld [vmem:[%s1296_s1 + $0x360] sm:$0xff]  ;;  %v678_v37 = vld [vmem:[%s1296_s1 + $0x3d8] sm:$0xff] }
  0x1e   :  { %744 = vmatprep.subr.mxu1 %v601_v0  ;;  %710 = vmatpush3.msra.mxu0 %v17_v3  ;;  %v628_v38 = vld [vmem:[%s1296_s1 + $0x258] sm:$0xff]  ;;  %v643_v40 = vld [vmem:[%s1296_s1 + $0x2d0] sm:$0xff]  ;;  %v642_v44 = vld [vmem:[%s1296_s1 + $0x2c8] sm:$0xff] }
  0x1f   :  { %745 = vmatpush3.msra.mxu1 %v585_v4  ;;  %711 = vmatprep.subr.mxu0 %v32_v5  ;;  %v662_v39 = vld [vmem:[%s1296_s1 + $0x358] sm:$0xff]  ;;  %v677_v41 = vld [vmem:[%s1296_s1 + $0x3d0] sm:$0xff]  ;;  %v676_v45 = vld [vmem:[%s1296_s1 + $0x3c8] sm:$0xff] }
  0x20   :  { %746 = vmatprep.subr.mxu1 %v600_v6  ;;  %712 = vmatpush3.msra.mxu0 %v16_v9  ;;  %v627_v42 = vld [vmem:[%s1296_s1 + $0x250] sm:$0xff]  ;;  %v626_v46 = vld [vmem:[%s1296_s1 + $0x248] sm:$0xff]  ;;  %v641_v48 = vld [vmem:[%s1296_s1 + $0x2c0] sm:$0xff] }
  0x21   :  { %747 = vmatpush3.msra.mxu1 %v584_v10  ;;  %713 = vmatprep.subr.mxu0 %v31_v11  ;;  %v661_v43 = vld [vmem:[%s1296_s1 + $0x350] sm:$0xff]  ;;  %v660_v47 = vld [vmem:[%s1296_s1 + $0x348] sm:$0xff]  ;;  %v675_v49 = vld [vmem:[%s1296_s1 + $0x3c0] sm:$0xff] }
  0x22   :  { %748 = vmatprep.subr.mxu1 %v599_v12  ;;  %714 = vmatpush3.msra.mxu0 %v15_v15  ;;  %v625_v50 = vld [vmem:[%s1296_s1 + $0x240] sm:$0xff] }
  0x23   :  { %138 = vmatprep.mubr.f32.mxu0 %v71_v13  ;;  %749 = vmatpush3.msra.mxu1 %v583_v16 }
  0x24   :  { %274 = vmatprep.mubr.f32.mxu1 %v207_v17  ;;  %139 = vmatmul.mubr.f32.vlgmr.msra.gmra.mxu0 %v64_v18 }
  0x25   :  { %275 = vmatmul.mubr.f32.vlgmr.msra.gmra.mxu1 %v200_v19  ;;  %753 = vmatprep.subr.mxu0 %v648_v20 }
  0x26   :  { %788 = vmatprep.subr.mxu1 %v682_v21  ;;  %754 = vmatpush3.msra.mxu0 %v632_v22 }
  0x27   :  { %789 = vmatpush3.msra.mxu1 %v666_v23  ;;  %755 = vmatprep.subr.mxu0 %v647_v24 }
  0x28   :  { %790 = vmatprep.subr.mxu1 %v681_v25  ;;  %756 = vmatpush3.msra.mxu0 %v631_v26 }
  0x29   :  { %791 = vmatpush3.msra.mxu1 %v665_v27  ;;  %757 = vmatprep.subr.mxu0 %v646_v28 }
  0x2a   :  { %792 = vmatprep.subr.mxu1 %v680_v29  ;;  %758 = vmatpush3.msra.mxu0 %v630_v30 }
  0x2b   :  { %793 = vmatpush3.msra.mxu1 %v664_v31  ;;  %759 = vmatprep.subr.mxu0 %v645_v32 }
  0x2c   :  { %794 = vmatprep.subr.mxu1 %v679_v33  ;;  %760 = vmatpush3.msra.mxu0 %v629_v34 }
  0x2d   :  { %795 = vmatpush3.msra.mxu1 %v663_v35  ;;  %761 = vmatprep.subr.mxu0 %v644_v36 }
  0x2e   :  { %796 = vmatprep.subr.mxu1 %v678_v37  ;;  %762 = vmatpush3.msra.mxu0 %v628_v38 }
  0x2f   :  { %797 = vmatpush3.msra.mxu1 %v662_v39  ;;  %763 = vmatprep.subr.mxu0 %v643_v40 }
  0x30   :  { %798 = vmatprep.subr.mxu1 %v677_v41 }
  0x31   :  { %7 = vsyncpa [#allocation3], 0  ;;  %764 = vmatpush3.msra.mxu0 %v627_v42  ;;  %799 = vmatpush3.msra.mxu1 %v661_v43  ;;  %v659_v51 = vld [vmem:[%s1296_s1 + $0x340] sm:$0xff]  ;;  %v640_v52 = vld [vmem:[%s1296_s1 + $0x2b8] sm:$0xff]  ;;  %vm144_vm0 = vcmask 58368   ;;  %s852_s27 = smov 24  }
  0x32   :  { %v674_v54 = vld [vmem:[%s1296_s1 + $0x3b8] sm:$0xff]  ;;  %765 = vmatprep.subr.mxu0 %v642_v44  ;;  %800 = vmatprep.subr.mxu1 %v676_v45  ;;  %v615_v55 = vld [vmem:[%s1295_s0 + $0x2] ss:$4 sm:$0x3]  ;;  %v639_v61 = vld [vmem:[%s1296_s1 + $0x2b0] sm:$0xff]  ;;  %s853_s28 = smov 16  }
  0x33   :  { %v616_v56 = vld [vmem:[%s1295_s0 + $0xa] ss:$4 sm:$0x3]  ;;  %766 = vmatpush3.msra.mxu0 %v626_v46  ;;  %801 = vmatpush3.msra.mxu1 %v660_v47  ;;  %v649_v57 = vld [vmem:[%s1295_s0 + $0x3] ss:$4 sm:$0x3] }
  0x34   :  { %v650_v58 = vld [vmem:[%s1295_s0 + $0xb] ss:$4 sm:$0x3]  ;;  %767 = vmatprep.subr.mxu0 %v641_v48  ;;  %802 = vmatprep.subr.mxu1 %v675_v49  ;;  %v624_v59 = vld [vmem:[%s1296_s1 + $0x238] sm:$0xff]  ;;  %v673_v62 = vld [vmem:[%s1296_s1 + $0x3b0] sm:$0xff]  ;;  %v325_v63 = vcombine.low %v615_v55, %v616_v56  ;;  %vm284_vm1 = vcmask 123968  }
  0x35   :  { %v658_v60 = vld [vmem:[%s1296_s1 + $0x338] sm:$0xff]  ;;  %768 = vmatpush3.msra.mxu0 %v625_v50  ;;  %803 = vmatpush3.msra.mxu1 %v659_v51  ;;  %v623_v0 = vld [vmem:[%s1296_s1 + $0x230] sm:$0xff]  ;;  %v465_v2 = vcombine.low %v649_v57, %v650_v58  ;;  %v638_v3 = vld [vmem:[%s1296_s1 + $0x2a8] sm:$0xff]  ;;  %s854_s29 = smov [#allocation2]   ;;  %vm424_vm2 = vcmask 189568   ;;  %vm564_vm3 = vcmask 255168  }
  0x36   :  { %769 = vmatprep.subr.mxu0 %v640_v52  ;;  %804 = vmatprep.subr.mxu1 %v674_v54  ;;  %v657_v1 = vld [vmem:[%s1296_s1 + $0x330] sm:$0xff]  ;;  %v672_v4 = vld [vmem:[%s1296_s1 + $0x3a8] sm:$0xff]  ;;  %v637_v7 = vld [vmem:[%s1296_s1 + $0x2a0] sm:$0xff]  ;;  %v332_v9 = vrot.slane %v325_v63, %v1014_v53  ;;  %s572_s30 = sshll.u32 %s854_s29, 4  ;;  %s573_s30 = int_to_ptr.vmem [resolvable:$true] %s572_s30 }
  0x37   :  { %770 = vmatpush3.msra.mxu0 %v624_v59  ;;  %805 = vmatpush3.msra.mxu1 %v658_v60  ;;  %v622_v5 = vld [vmem:[%s1296_s1 + $0x228] sm:$0xff]  ;;  %v671_v8 = vld [vmem:[%s1296_s1 + $0x3a0] sm:$0xff]  ;;  %v472_v12 = vrot.slane %v465_v2, %v1014_v53  ;;  %v636_v13 = vld [vmem:[%s1296_s1 + $0x298] sm:$0xff]  ;;  %s828_s3 = scalar_lea.vmem %s573_s30, 32  ;;  %p833_p1 = scmp.lt.s32.totalorder %s573_s30, %s573_s30 }
  0x38   :  { %771 = vmatprep.subr.mxu0 %v639_v61  ;;  %806 = vmatprep.subr.mxu1 %v673_v62  ;;  %v656_v6 = vld [vmem:[%s1296_s1 + $0x328] sm:$0xff]  ;;  %v621_v10 = vld [vmem:[%s1296_s1 + $0x220] sm:$0xff]  ;;  %v670_v14 = vld [vmem:[%s1296_s1 + $0x398] sm:$0xff]  ;;  %v333_v19 = vcombine.high %v332_v9, %v332_v9  ;;  %v340_v33 = vrot.slane %v332_v9, %v1014_v53  ;;  %p829_p0 = scmp.ne.s32.totalorder %s573_s30, %s828_s3  ;;  %p834_p2 = scmp.lt.s32.totalorder %s828_s3, %s828_s3 }
  0x39   :  { %772 = vmatpush3.msra.mxu0 %v623_v0  ;;  %807 = vmatpush3.msra.mxu1 %v657_v1  ;;  %v655_v11 = vld [vmem:[%s1296_s1 + $0x320] sm:$0xff]  ;;  %v620_v15 = vld [vmem:[%s1296_s1 + $0x218] sm:$0xff]  ;;  %v635_v17 = vld [vmem:[%s1296_s1 + $0x290] sm:$0xff]  ;;  %v473_v22 = vcombine.high %v472_v12, %v472_v12  ;;  %v480_v34 = vrot.slane %v472_v12, %v1014_v53 }
  0x3a   :  { %773 = vmatprep.subr.mxu0 %v638_v3  ;;  %808 = vmatprep.subr.mxu1 %v672_v4  ;;  %v654_v16 = vld [vmem:[%s1296_s1 + $0x318] sm:$0xff]  ;;  %v669_v18 = vld [vmem:[%s1296_s1 + $0x390] sm:$0xff]  ;;  %v634_v23 = vld [vmem:[%s1296_s1 + $0x288] sm:$0xff]  ;;  %v347_v29 = vrot.slane %v333_v19, %v1014_v53  ;;  %p835_p3 = por %p834_p2, %p833_p1 }
  0x3b   :  { %774 = vmatpush3.msra.mxu0 %v622_v5  ;;  %809 = vmatpush3.msra.mxu1 %v656_v6  ;;  %v619_v20 = vld [vmem:[%s1296_s1 + $0x210] sm:$0xff]  ;;  %v668_v24 = vld [vmem:[%s1296_s1 + $0x388] sm:$0xff]  ;;  %v633_v27 = vld [vmem:[%s1296_s1 + $0x280] sm:$0xff]  ;;  %v487_v31 = vrot.slane %v473_v22, %v1014_v53 }
  0x3c   :  { %775 = vmatprep.subr.mxu0 %v637_v7  ;;  %810 = vmatprep.subr.mxu1 %v671_v8  ;;  %v653_v21 = vld [vmem:[%s1296_s1 + $0x310] sm:$0xff]  ;;  %v618_v25 = vld [vmem:[%s1296_s1 + $0x208] sm:$0xff]  ;;  %v667_v28 = vld [vmem:[%s1296_s1 + $0x380] sm:$0xff]  ;;  %p836_p4 = pnand %p835_p3, %p829_p0 }
  0x3d   :  { %776 = vmatpush3.msra.mxu0 %v621_v10  ;;  %811 = vmatpush3.msra.mxu1 %v655_v11  ;;  %v652_v26 = vld [vmem:[%s1296_s1 + $0x308] sm:$0xff]  ;;  %v617_v30 = vld [vmem:[%s1296_s1 + $0x200] sm:$0xff] }
  0x3e   :  { %777 = vmatprep.subr.mxu0 %v636_v13  ;;  %812 = vmatprep.subr.mxu1 %v670_v14  ;;  %v651_v32 = vld [vmem:[%s1296_s1 + $0x300] sm:$0xff]  ;;  %s851_s1 = smov 8  }
  0x3f   :  { %778 = vmatpush3.msra.mxu0 %v620_v15  ;;  %813 = vmatpush3.msra.mxu1 %v654_v16 }
  0x40   :  { %779 = vmatprep.subr.mxu0 %v635_v17  ;;  %814 = vmatprep.subr.mxu1 %v669_v18 }
  0x41   :  { %780 = vmatpush3.msra.mxu0 %v619_v20  ;;  %815 = vmatpush3.msra.mxu1 %v653_v21 }
  0x42   :  { %781 = vmatprep.subr.mxu0 %v634_v23  ;;  %816 = vmatprep.subr.mxu1 %v668_v24 }
  0x43   :  { %782 = vmatpush3.msra.mxu0 %v618_v25  ;;  %817 = vmatpush3.msra.mxu1 %v652_v26 }
  0x44   :  { %783 = vmatprep.subr.mxu0 %v633_v27  ;;  %818 = vmatprep.subr.mxu1 %v667_v28 }
  0x45   :  { %784 = vmatpush3.msra.mxu0 %v617_v30  ;;  %414 = vmatprep.mubr.f32.mxu0 %v347_v29 }
  0x46   :  { %819 = vmatpush3.msra.mxu1 %v651_v32  ;;  %554 = vmatprep.mubr.f32.mxu1 %v487_v31 }
  0x47   :  { %415 = vmatmul.mubr.f32.vlgmr.msra.gmra.mxu0 %v340_v33  ;;  %555 = vmatmul.mubr.f32.vlgmr.msra.gmra.mxu1 %v480_v34 }
  0xe4   :  { %v715_v35 = vpop.f32.mrf.mxu0 }
  0xe5   :  { %v750_v36 = vpop.f32.mrf.mxu1 }
  0xe6   :  { %v716_v37 = vpop.f32.mrf.mxu0 }
  0xe7   :  { %v751_v38 = vpop.f32.mrf.mxu1  ;;  %v717_v39 = vadd.f32 %v716_v37, %v715_v35 }
  0xe8   :  { %v752_v40 = vadd.f32 %v751_v38, %v750_v36 }
  0xe9   :  { %145 = vst.msk [vmem:[#allocation2] sm:$0x3] %vm144_vm0, %v717_v39 }
  0xea   :  { %281 = vrot.lane.b32.xlu0 %v752_v40, %s851_s1 }
 0x107   :  { %v785_v41 = vpop.f32.mrf.mxu0  ;;  %v820_v53 = vpop.f32.mrf.mxu1 }
 0x109   :  { %v786_v42 = vpop.f32.mrf.mxu0  ;;  %v821_v43 = vpop.f32.mrf.mxu1 }
 0x10a   :  { %v787_v44 = vadd.f32 %v786_v42, %v785_v41  ;;  %v822_v45 = vadd.f32 %v821_v43, %v820_v53 }
 0x10c   :  { %561 = vrot.lane.b32.xlu1 %v822_v45, %s852_s27  ;;  %421 = vrot.lane.b32.xlu0 %v787_v44, %s853_s28 }
 0x15c   :  { %v282_v46 = vpop.permute.xlu0 %281 }
 0x15d   :  { %285 = vst.msk [vmem:[#allocation2] sm:$0x3] %vm284_vm1, %v282_v46 }
 0x17e   :  { %v562_v47 = vpop.permute.xlu1 %561  ;;  %v422_v48 = vpop.permute.xlu0 %421 }
 0x17f   :  { %425 = vst.msk [vmem:[#allocation2] sm:$0x3] %vm424_vm2, %v422_v48 }
 0x180   :  { %565 = vst.msk [vmem:[#allocation2] sm:$0x3] %vm564_vm3, %v562_v47 }
 0x181   :  { %839 = shalt.err (!%p836_p4)
}
 0x182   :  { %575 = dma.vmem_to_hbm [thread:$0]  %s573_s30, 32, %s1297_s2, [#allocation3]  }
 0x183   :  { %848 = dma.done.wait [#allocation3], 32  }
 0x184   :  { %849 = vsyncadd [#allocation3], 4294967264 }
 0x185   :  { %579 = vsyncpa [#allocation3], 1 }

</bundles_post_ra>
